<compile_context>
chip_gen: v7x
topology: tpu7x:2x2x1
jax: 0.10.0
libtpu: 0.0.40
codegen_flags: <defaults>
</compile_context>

<pallas_src>
import functools

import jax
import jax.numpy as jnp
from jax.experimental import pallas as pl
from jax.experimental.pallas import tpu as pltpu

_LANE = 128       # TPU lane width
_SUBLANE = 8      # f32 sublane granularity
_OUT_PAD = 16     # 10 output classes padded to 16 columns (narrow HBM writeback)


def _round_up(x, m):
    return ((x + m - 1) // m) * m


# --------------------------------------------------------------------------
# Kernels
# --------------------------------------------------------------------------

def _fused_kernel(x1_ref, x2_ref, wc1_ref, wc2_ref, bc_ref, o_ref):
    # out = x1 @ (W1@W3) + x2 @ (W2@W3) + ((b1+b2)@W3 + b3), 16-wide output.
    cd = wc1_ref.dtype
    acc = jnp.dot(x1_ref[...].astype(cd), wc1_ref[...],
                  preferred_element_type=jnp.float32)
    acc += jnp.dot(x2_ref[...].astype(cd), wc2_ref[...],
                   preferred_element_type=jnp.float32)
    o_ref[...] = (acc + bc_ref[...].astype(jnp.float32)).astype(o_ref.dtype)


def _two_layer_kernel(x1_ref, x2_ref, w1_ref, w2_ref, b12_ref, w3_ref, b3_ref,
                      o_ref):
    # medium = x1 @ W1 + x2 @ W2 + (b1 + b2)      -> (block_b, 1024)
    cd = w1_ref.dtype
    med = jnp.dot(x1_ref[...].astype(cd), w1_ref[...],
                  preferred_element_type=jnp.float32)
    med += jnp.dot(x2_ref[...].astype(cd), w2_ref[...],
                   preferred_element_type=jnp.float32)
    med += b12_ref[...].astype(jnp.float32)
    # out = medium @ W3 + b3                      -> (block_b, 16)
    out = jnp.dot(med.astype(w3_ref.dtype), w3_ref[...],
                  preferred_element_type=jnp.float32)
    o_ref[...] = (out + b3_ref[...].astype(jnp.float32)).astype(o_ref.dtype)


# --------------------------------------------------------------------------
# Block-size selection + shared pallas_call driver (batch-tiled grid)
# --------------------------------------------------------------------------

def _pick_block_b(B, row_bytes, *, max_block=2048, min_steps=2,
                  vmem_budget=12 * 1024 * 1024):
    """Largest batch tile that (a) keeps the per-row (double-buffered) VMEM
    footprint under `vmem_budget` and (b) leaves >= min_steps grid steps
    (megacore sharding on v7x) once the batch is large enough."""
    b_all = _round_up(B, _SUBLANE)
    bb = min(max_block, b_all)
    bb = min(bb, max(_SUBLANE, vmem_budget // max(row_bytes, 1)))
    if b_all >= min_steps * _LANE:
        bb = min(max(bb, _LANE), _round_up(pl.cdiv(b_all, min_steps), _LANE))
    if bb >= _LANE:
        bb = (bb // _LANE) * _LANE
    else:
        bb = max(_SUBLANE, (bb // _SUBLANE) * _SUBLANE)
    return bb


def _run(kernel, xs, weights, *, max_block, extra_row_bytes=0,
         out_cols=_OUT_PAD):
    B = xs[0].shape[0]
    out_dtype = xs[0].dtype

    # Per-batch-row VMEM bytes (double-buffered activation + output blocks).
    row_bytes = sum(2 * x.shape[1] * x.dtype.itemsize for x in xs)
    row_bytes += 2 * out_cols * jnp.dtype(out_dtype).itemsize + extra_row_bytes
    block_b = _pick_block_b(B, row_bytes, max_block=max_block)

    in_specs = [pl.BlockSpec((block_b, x.shape[1]), lambda i: (i, 0))
                for x in xs]
    # Weights / biases are small 2-D arrays; same (constant) block every step.
    in_specs += [pl.BlockSpec(w.shape, lambda i: (0, 0)) for w in weights]

    return pl.pallas_call(
        kernel,
        out_shape=jax.ShapeDtypeStruct((B, out_cols), out_dtype),
        grid=(pl.cdiv(B, block_b),),          # ragged last block handled by Pallas
        in_specs=in_specs,
        out_specs=pl.BlockSpec((block_b, out_cols), lambda i: (i, 0)),
        compiler_params=pltpu.CompilerParams(
            dimension_semantics=("parallel",),   # batch axis -> megacore on v7x
            vmem_limit_bytes=32 * 1024 * 1024,   # safe on v5e/v6e/v7x
        ),
    )(*xs, *weights)


# --------------------------------------------------------------------------
# Wrappers
# --------------------------------------------------------------------------

@functools.partial(jax.jit, static_argnames=("n_out",))
def meta_classify_fused(x1, x2, wc1, wc2, bc, *, n_out=10):
    """Default fast path: prefolded weights, two small matmuls, 16-wide output."""
    out = _run(_fused_kernel, (x1, x2), (wc1, wc2, bc), max_block=2048)
    return out[:, :n_out]


@functools.partial(jax.jit, static_argnames=("n_out",))
def meta_classify_two_layer(x1, x2, w1, w2, b12, w3n, b3n, *, n_out=10):
    """Structured path: explicit 1024-wide intermediate (block_b capped at 512
    so the medium temp + resident weights stay well inside v7x VMEM)."""
    hidden = w1.shape[1]
    out = _run(_two_layer_kernel, (x1, x2), (w1, w2, b12, w3n, b3n),
               max_block=512, extra_row_bytes=hidden * 4)
    return out[:, :n_out]


def prepare_params(w1, b1, w2, b2, w3, b3, *, fuse=True, compute_dtype=None):
    """One-time weight preprocessing (outside the kernel).

    fuse=True : (wc1, wc2, bc) with wc_i = W_i @ W3_pad (F, 16) and
                bc = (b1 + b2) @ W3_pad + b3_pad (1, 16).
    fuse=False: (w1, w2, b12, w3_pad, b3_pad) with W3 padded only to 16 cols.
    compute_dtype (e.g. jnp.bfloat16) casts the matmul weights; biases stay f32.
    """
    hp = jax.lax.Precision.HIGHEST
    n_out = w3.shape[1]
    w3p = jnp.pad(w3, ((0, 0), (0, _OUT_PAD - n_out)))             # (H, 16)
    b3p = jnp.pad(b3.reshape(1, -1), ((0, 0), (0, _OUT_PAD - n_out)))
    b12 = (b1 + b2).reshape(1, -1)                                  # (1, H)
    if fuse:
        wc1 = jnp.dot(w1, w3p, precision=hp)                        # (F, 16)
        wc2 = jnp.dot(w2, w3p, precision=hp)                        # (F, 16)
        bc = jnp.dot(b12, w3p, precision=hp) + b3p                  # (1, 16)
        if compute_dtype is not None:
            wc1, wc2 = wc1.astype(compute_dtype), wc2.astype(compute_dtype)
        return wc1, wc2, bc
    if compute_dtype is not None:
        w1, w2, w3p = (a.astype(compute_dtype) for a in (w1, w2, w3p))
    return w1, w2, b12, w3p, b3p


def init_params(key, fea_num, hidden=1024, n_classes=10, dtype=jnp.float32):
    """PyTorch nn.Linear-style init: U(-1/sqrt(fan_in), 1/sqrt(fan_in)).
    Weights stored (in_features, out_features); biases (out_features,)."""
    k1, k2, k3, k4, k5, k6 = jax.random.split(key, 6)
    bound1 = 1.0 / jnp.sqrt(jnp.float32(fea_num))
    bound3 = 1.0 / jnp.sqrt(jnp.float32(hidden))
    w1 = jax.random.uniform(k1, (fea_num, hidden), dtype, -bound1, bound1)
    b1 = jax.random.uniform(k2, (hidden,), dtype, -bound1, bound1)
    w2 = jax.random.uniform(k3, (fea_num, hidden), dtype, -bound1, bound1)
    b2 = jax.random.uniform(k4, (hidden,), dtype, -bound1, bound1)
    w3 = jax.random.uniform(k5, (hidden, n_classes), dtype, -bound3, bound3)
    b3 = jax.random.uniform(k6, (n_classes,), dtype, -bound3, bound3)
    return w1, b1, w2, b2, w3, b3


if __name__ == "__main__":
    key = jax.random.PRNGKey(0)
    kx1, kx2, kp = jax.random.split(key, 3)

    B, F = 8, 32           # batch=8, fea_num=32 (small demo shapes)
    x1 = jax.random.normal(kx1, (B, F), jnp.float32)
    x2 = jax.random.normal(kx2, (B, F), jnp.float32)
    w1, b1, w2, b2, w3, b3 = init_params(kp, F)

    hp = jax.lax.Precision.HIGHEST

    def ref_fn(a, b):
        med = (jnp.dot(a, w1, precision=hp) + b1
               + jnp.dot(b, w2, precision=hp) + b2)
        return jnp.dot(med, w3, precision=hp) + b3

    ref = ref_fn(x1, x2)

    # Fused (default) path, f32.
    fused = prepare_params(w1, b1, w2, b2, w3, b3, fuse=True)
    out_fused = jax.block_until_ready(meta_classify_fused(x1, x2, *fused))
    assert out_fused.shape == (B, 10)
    assert jnp.allclose(out_fused, ref, atol=1e-4, rtol=1e-4), "fused mismatch"

    # Structured two-matmul path, f32.
    tl = prepare_params(w1, b1, w2, b2, w3, b3, fuse=False)
    out_two = jax.block_until_ready(meta_classify_two_layer(x1, x2, *tl))
    assert out_two.shape == (B, 10)
    assert jnp.allclose(out_two, ref, atol=1e-4, rtol=1e-4), "two-layer mismatch"

    # Ragged batch / multi-step grid (exercises cdiv grid + discarded OOB rows).
    B2 = 300
    kr1, kr2 = jax.random.split(kx2)
    y1 = jax.random.normal(kr1, (B2, F), jnp.float32)
    y2 = jax.random.normal(kr2, (B2, F), jnp.float32)
    out_rag = jax.block_until_ready(meta_classify_fused(y1, y2, *fused))
    assert out_rag.shape == (B2, 10)
    assert jnp.allclose(out_rag, ref_fn(y1, y2), atol=1e-4, rtol=1e-4), \
        "ragged-batch mismatch"

    # bf16 compute path (halves weight/activation read bytes); looser tolerance.
    fused_bf16 = prepare_params(w1, b1, w2, b2, w3, b3, fuse=True,
                                compute_dtype=jnp.bfloat16)
    out_bf16 = jax.block_until_ready(meta_classify_fused(x1, x2, *fused_bf16))
    assert jnp.allclose(out_bf16, ref, atol=5e-2, rtol=5e-2), "bf16 mismatch"

    print("KERNEL_OK")
</pallas_src>

<mosaic_0001>
module attributes {stable_mosaic.version = 11 : i64} {
  func.func @_fused_kernel(%arg0: i32, %arg1: memref<8x32xf32, #tpu.memory_space<vmem>>, %arg2: memref<8x32xf32, #tpu.memory_space<vmem>>, %arg3: memref<32x16xf32, #tpu.memory_space<vmem>>, %arg4: memref<32x16xf32, #tpu.memory_space<vmem>>, %arg5: memref<1x16xf32, #tpu.memory_space<vmem>>, %arg6: memref<8x16xf32, #tpu.memory_space<vmem>>) attributes {dimension_semantics = [#tpu.dimension_semantics<parallel>], iteration_bounds = array<i64: 1>, scalar_prefetch = 0 : i64, scratch_operands = 0 : i64, tpu.core_type = #tpu.core_type<tc>, window_params = [{transform_indices = @transform_0, window_bounds = array<i64: 8, 32>}, {transform_indices = @transform_1, window_bounds = array<i64: 8, 32>}, {pipeline_mode = #tpu.pipeline_mode<synchronous>, transform_indices = @transform_2, window_bounds = array<i64: 32, 16>}, {pipeline_mode = #tpu.pipeline_mode<synchronous>, transform_indices = @transform_3, window_bounds = array<i64: 32, 16>}, {pipeline_mode = #tpu.pipeline_mode<synchronous>, transform_indices = @transform_4, window_bounds = array<i64: 1, 16>}, {transform_indices = @transform_5, window_bounds = array<i64: 8, 16>}]} {
    %c0 = arith.constant 0 : index
    %c0_0 = arith.constant 0 : index
    %0 = vector.load %arg1[%c0, %c0_0] : memref<8x32xf32, #tpu.memory_space<vmem>>, vector<8x32xf32>
    %c0_1 = arith.constant 0 : index
    %c0_2 = arith.constant 0 : index
    %1 = vector.load %arg3[%c0_1, %c0_2] : memref<32x16xf32, #tpu.memory_space<vmem>>, vector<32x16xf32>
    %cst = arith.constant dense<0.000000e+00> : vector<8x16xf32>
    %2 = tpu.matmul %0, %1, %cst {dimension_numbers = #tpu.dot_dimension_numbers<[1], [0], [0], [1], [0, 0, 1, 1], [], []>} : vector<8x32xf32>, vector<32x16xf32>, vector<8x16xf32> -> vector<8x16xf32>
    %c0_3 = arith.constant 0 : index
    %c0_4 = arith.constant 0 : index
    %3 = vector.load %arg2[%c0_3, %c0_4] : memref<8x32xf32, #tpu.memory_space<vmem>>, vector<8x32xf32>
    %c0_5 = arith.constant 0 : index
    %c0_6 = arith.constant 0 : index
    %4 = vector.load %arg4[%c0_5, %c0_6] : memref<32x16xf32, #tpu.memory_space<vmem>>, vector<32x16xf32>
    %cst_7 = arith.constant dense<0.000000e+00> : vector<8x16xf32>
    %5 = tpu.matmul %3, %4, %cst_7 {dimension_numbers = #tpu.dot_dimension_numbers<[1], [0], [0], [1], [0, 0, 1, 1], [], []>} : vector<8x32xf32>, vector<32x16xf32>, vector<8x16xf32> -> vector<8x16xf32>
    %6 = arith.addf %2, %5 : vector<8x16xf32>
    %c0_8 = arith.constant 0 : index
    %c0_9 = arith.constant 0 : index
    %7 = vector.load %arg5[%c0_8, %c0_9] : memref<1x16xf32, #tpu.memory_space<vmem>>, vector<1x16xf32>
    %8 = vector.broadcast %7 : vector<1x16xf32> to vector<8x16xf32>
    %9 = arith.addf %6, %8 : vector<8x16xf32>
    %c0_10 = arith.constant 0 : index
    %c0_11 = arith.constant 0 : index
    %10 = vector.load %arg6[%c0_10, %c0_11] : memref<8x16xf32, #tpu.memory_space<vmem>>, vector<8x16xf32>
    tpu.vector_store %arg6[%c0_10, %c0_11], %9 {strides = array<i32>} : memref<8x16xf32, #tpu.memory_space<vmem>>, vector<8x16xf32>,
    return
  }
  func.func @transform_0(%arg0: i32) -> (i32, i32) {
    %c0_i32 = arith.constant 0 : i32
    %c0_i32_0 = arith.constant 0 : i32
    return %arg0, %c0_i32 : i32, i32
  }
  func.func @transform_1(%arg0: i32) -> (i32, i32) {
    %c0_i32 = arith.constant 0 : i32
    %c0_i32_0 = arith.constant 0 : i32
    return %arg0, %c0_i32 : i32, i32
  }
  func.func @transform_2(%arg0: i32) -> (i32, i32) {
    %c0_i32 = arith.constant 0 : i32
    %c0_i32_0 = arith.constant 0 : i32
    %c0_i32_1 = arith.constant 0 : i32
    return %c0_i32, %c0_i32_0 : i32, i32
  }
  func.func @transform_3(%arg0: i32) -> (i32, i32) {
    %c0_i32 = arith.constant 0 : i32
    %c0_i32_0 = arith.constant 0 : i32
    %c0_i32_1 = arith.constant 0 : i32
    return %c0_i32, %c0_i32_0 : i32, i32
  }
  func.func @transform_4(%arg0: i32) -> (i32, i32) {
    %c0_i32 = arith.constant 0 : i32
    %c0_i32_0 = arith.constant 0 : i32
    %c0_i32_1 = arith.constant 0 : i32
    return %c0_i32, %c0_i32_0 : i32, i32
  }
  func.func @transform_5(%arg0: i32) -> (i32, i32) {
    %c0_i32 = arith.constant 0 : i32
    %c0_i32_0 = arith.constant 0 : i32
    return %arg0, %c0_i32 : i32, i32
  }
}

</mosaic_0001>

<bundles_post_ra>
// kernel: meta_classify_fused.1
= control target key start
LH: loop header
LB: loop body
LE: loop exit
PB: predicated region body
PF: predicated region fallthrough
CT: control target
= control target key end

     0   :  { %v277_v3 = vmov 0.0|0.0   ;;  %vm278_vm0 = vmmov 0   ;;  %v279_v11 = vmov 0.0   ;;  %s356_s0 = inlined_call_operand.vmem [shape: f32[8,32], index: 0, kind: input, shape index: {}]   ;;  %s357_s1 = inlined_call_operand.vmem [shape: f32[8,32], index: 1, kind: input, shape index: {}]   ;;  %s358_s2 = inlined_call_operand.vmem [shape: f32[32,16], index: 2, kind: input, shape index: {}]   ;;  %s359_s3 = inlined_call_operand.vmem [shape: f32[32,16], index: 3, kind: input, shape index: {}]   ;;  %s360_s4 = inlined_call_operand.vmem [shape: f32[1,16], index: 4, kind: input, shape index: {}]   ;;  %s361_s5 = inlined_call_operand.hbm [shape: f32[8,16], index: 5, kind: output, shape index: {}]  }
   0x1   :  { %v27_v0 = vld [vmem:[%s359_s3] sm:$0xff]  ;;  %v28_v1 = vld [vmem:[%s359_s3 + $0x8] sm:$0xff]  ;;  %237 = vmatprep.subr.bf16.mxu0 %v277_v3  ;;  %243 = vmatprep.subr.bf16.mxu1 %v277_v3  ;;  %v29_v6 = vld [vmem:[%s359_s3 + $0x10] sm:$0xff] }
   0x2   :  { %v22_v2 = vld [vmem:[%s358_s2] sm:$0xff]  ;;  %v238_v4 = vpack.c.bf16 %v28_v1, %v27_v0  ;;  %v23_v5 = vld [vmem:[%s358_s2 + $0x8] sm:$0xff]  ;;  %v30_v7 = vld [vmem:[%s359_s3 + $0x18] sm:$0xff]  ;;  %223 = vmatprep.mubr.msk.f32.mxu0 %vm278_vm0, %v279_v11  ;;  %234 = vmatprep.mubr.msk.f32.mxu1 %vm278_vm0, %v279_v11 }
   0x3   :  { %v244_v8 = vpack.c.bf16 %v23_v5, %v22_v2  ;;  %v24_v9 = vld [vmem:[%s358_s2 + $0x10] sm:$0xff]  ;;  %v25_v10 = vld [vmem:[%s358_s2 + $0x18] sm:$0xff]  ;;  %v241_v12 = vpack.c.bf16 %v30_v7, %v29_v6 }
   0x4   :  { %239 = vmatpush3.bf16.msra.mxu0 %v238_v4 }
   0x5   :  { %10 = vsyncpa [#allocation3], 0  ;;  %245 = vmatpush3.bf16.msra.mxu1 %v244_v8  ;;  %240 = vmatprep.subr.bf16.mxu0 %v277_v3  ;;  %v247_v13 = vpack.c.bf16 %v25_v10, %v24_v9  ;;  %v26_v14 = vld [vmem:[%s357_s1] sm:$0xff]  ;;  %vm31_vm1 = vcmask 261120   ;;  %s280_s13 = smov [#allocation2]   ;;  %vm186_vm2 = vcmask 130048  }
   0x6   :  { %246 = vmatprep.subr.bf16.mxu1 %v277_v3  ;;  %v21_v15 = vld [vmem:[%s356_s0] sm:$0xff]  ;;  %s194_s14 = sshll.u32 %s280_s13, 4  ;;  %s195_s14 = int_to_ptr.vmem [resolvable:$true] %s194_s14 }
   0x7   :  { %v204_v18 = vld [vmem:[%s360_s4] ss:$0 sm:$0xff]  ;;  %s253_s1 = scalar_lea.vmem %s195_s14, 128  ;;  %p258_p1 = scmp.lt.s32.totalorder %s195_s14, %s195_s14 }
   0x8   :  { %242 = vmatpush3.bf16.msra.mxu0 %v241_v12  ;;  %p254_p0 = scmp.ne.s32.totalorder %s195_s14, %s253_s1  ;;  %p259_p2 = scmp.lt.s32.totalorder %s253_s1, %s253_s1 }
   0x9   :  { %248 = vmatpush3.bf16.msra.mxu1 %v247_v13 }
   0xa   :  { %p260_p3 = por %p259_p2, %p258_p1 }
   0xb   :  { %224 = vmatmul.mubr.msk.f32.vlgmr.msra.gmra.mrb[0].mxu0 %vm31_vm1, %v26_v14 }
   0xc   :  { %235 = vmatmul.mubr.msk.f32.vlgmr.msra.gmra.mrb[0].mxu1 %vm31_vm1, %v21_v15  ;;  %p261_p4 = pnand %p260_p3, %p254_p0 }
  0xde   :  { %v101_v16 = vpop.f32.mrb[0].mxu0 }
  0xdf   :  { %v174_v17 = vpop.f32.mrb[0].mxu1  ;;  %v225_v19 = vpop.f32.mrb[1].mxu0 }
  0xe0   :  { %v175_v20 = vadd.f32 %v174_v17, %v101_v16  ;;  %v236_v21 = vpop.f32.mrb[1].mxu1 }
  0xe2   :  { %v185_v22 = vadd.f32 %v204_v18, %v175_v20 }
  0xe4   :  { %187 = vst.msk [vmem:[#allocation2] sm:$0xff] %vm186_vm2, %v185_v22 }
  0xe5   :  { %264 = shalt.err (!%p261_p4)
}
  0xe6   :  { %s265_s4 = scalar_lea.hbm %s361_s5, 128 }
  0xe7   :  { %p266_p5 = scmp.ne.s32.totalorder %s361_s5, %s265_s4  ;;  %p269_p6 = scmp.lt.u32.totalorder %s265_s4, %s361_s5 }
  0xe9   :  { %p271_p7 = pnand %p269_p6, %p266_p5 }
  0xeb   :  { %274 = shalt.err (!%p271_p7)
}
  0xec   :  { %197 = dma.vmem_to_hbm [thread:$0]  %s195_s14, 128, %s361_s5, [#allocation3]  }
  0xed   :  { %275 = dma.done.wait [#allocation3], 128  }
  0xee   :  { %276 = vsyncadd [#allocation3], 4294967168 }
  0xef   :  { %201 = vsyncpa [#allocation3], 1 }

</bundles_post_ra>
